<compile_context>
chip_gen: v7x
topology: tpu7x:2x2x1
jax: 0.10.0
libtpu: 0.0.40
codegen_flags: <defaults>
</compile_context>

<pallas_src>
import functools

import jax
import jax.numpy as jnp
from jax.experimental import pallas as pl
from jax.experimental.pallas import tpu as pltpu


def _round_up(x, m):
    return ((x + m - 1) // m) * m


def _global_pool_mil_kernel(bags_ref, w_ref, b_ref, out_ref, acc_ref, *,
                            inv_n, n_total, tn, mask_tail):
    # bags_ref: (TB, TN, F) streamed tile of bags
    # w_ref:    (F, O)      resident weight
    # b_ref:    (1, O)      resident bias
    # out_ref:  (TB, O)     resident across the N (reduction) axis
    # acc_ref:  (TB, F)     f32 scratch accumulator
    k = pl.program_id(1)

    @pl.when(k == 0)
    def _():
        acc_ref[...] = jnp.zeros_like(acc_ref)

    x = bags_ref[...]
    if mask_tail:
        # N % TN != 0: the last N-chunk reads past the array; zero those
        # instances before summing (select, not multiply, in case the
        # clipped-block padding contains NaN/Inf bit patterns).
        inst = jax.lax.broadcasted_iota(jnp.int32, (1, tn, 1), 1)
        valid = (k * tn + inst) < n_total
        x = jnp.where(valid, x, jnp.zeros_like(x))

    # Partial sum over this N-chunk, accumulated in f32.
    # NOTE: switch to a (TB, 1, F) keepdims accumulator only if a bundle dump
    # shows the store/XLU slot saturating; while HBM-bound this is hidden.
    acc_ref[...] += jnp.sum(x, axis=1, dtype=jnp.float32)

    @pl.when(k == pl.num_programs(1) - 1)
    def _():
        # Matmul on the raw sum in the weight's native dtype (bf16 keeps the
        # fast MXU path; intended, slightly different rounding than pure f32),
        # f32 accumulation, then a single 1/N scale on the (TB, O) result.
        feats = acc_ref[...].astype(w_ref.dtype)
        out = jnp.dot(feats, w_ref[...], preferred_element_type=jnp.float32)
        out = out * inv_n + b_ref[...].astype(jnp.float32)
        out_ref[...] = out.astype(out_ref.dtype)


def global_pool_mil(bags, weight, bias, *, tb=None, tn=None, vmem_limit_bytes=None):
    """
    bags:   (B, N, F)
    weight: (F, O)   (nn.Linear weight transposed)
    bias:   (O,)
    returns (B, O) = mean(bags, axis=1) @ weight + bias
    """
    B, N, F = bags.shape
    F2, O = weight.shape
    assert F == F2, "weight must be (in_feats, out_dim)"
    assert bias.shape == (O,)

    x_item = jnp.dtype(bags.dtype).itemsize
    w_item = jnp.dtype(weight.dtype).itemsize

    # --- generation-aware VMEM ceiling (v5e/v6e: 128 MiB, v7x: 64 MiB) ------
    try:
        vmem_cap = int(pltpu.get_tpu_info().vmem_capacity_bytes)
    except Exception:  # conservative (v7x-sized) fallback
        vmem_cap = 64 * 1024 * 1024
    if vmem_limit_bytes is None:
        vmem_limit_bytes = max(16 * 1024 * 1024,
                               min(vmem_cap - 8 * 1024 * 1024, 96 * 1024 * 1024))

    # --- bag-tile rows -------------------------------------------------------
    # Keep >= 2 bag tiles when B allows it so the "parallel" axis can shard
    # across both v7x TensorCores; at least 8 rows (sublane), cap at 256.
    if tb is None:
        tb = max(8, _round_up(pl.cdiv(B, 2), 8))
        tb = min(tb, 256)
    else:
        tb = max(8, _round_up(tb, 8))
    tb = min(tb, _round_up(B, 8))

    # --- VMEM budget for the streamed bags block -----------------------------
    def _bags_budget(tb_):
        resident = (
            2 * F * O * w_item      # weight (worst case: double-buffered fallback)
            + 2 * O * w_item        # bias
            + 4 * tb_ * F           # f32 accumulator scratch
            + 2 * tb_ * O * x_item  # output block (double-buffered)
        )
        return vmem_limit_bytes - resident - 4 * 1024 * 1024  # safety margin

    # Shrink tb if even a minimal (TN=8) double-buffered block would not fit.
    while tb > 8 and 2 * tb * 8 * F * x_item > _bags_budget(tb):
        tb = max(8, _round_up(tb // 2, 8))

    # --- N-chunk size (recomputed with the final tb) --------------------------
    if tn is None:
        per_row = 2 * tb * F * x_item            # bytes per instance, double-buffered
        max_tn = max(8, _bags_budget(tb) // max(1, per_row))
        tn = N if max_tn >= N else (max_tn // 8) * 8
    else:
        # (8,128) rule: 2nd-to-last block dim must be a multiple of 8 or full.
        tn = max(8, _round_up(tn, 8))
        if tn >= N:
            tn = N

    grid = (pl.cdiv(B, tb), pl.cdiv(N, tn))
    mask_tail = (N % tn) != 0

    bias2d = bias.reshape(1, O)
    kernel = functools.partial(
        _global_pool_mil_kernel,
        inv_n=1.0 / N, n_total=N, tn=tn, mask_tail=mask_tail)

    def _build(single_buffer_residents):
        resident_kw = ({"pipeline_mode": pl.Buffered(1)}
                       if single_buffer_residents else {})
        return pl.pallas_call(
            kernel,
            out_shape=jax.ShapeDtypeStruct((B, O), bags.dtype),
            grid=grid,
            in_specs=[
                pl.BlockSpec((tb, tn, F), lambda i, k: (i, k, 0)),          # bags tile
                pl.BlockSpec((F, O), lambda i, k: (0, 0), **resident_kw),   # weight
                pl.BlockSpec((1, O), lambda i, k: (0, 0), **resident_kw),   # bias
            ],
            out_specs=pl.BlockSpec((tb, O), lambda i, k: (i, 0)),           # resident over k
            scratch_shapes=[pltpu.VMEM((tb, F), jnp.float32)],
            compiler_params=pltpu.CompilerParams(
                dimension_semantics=("parallel", "arbitrary"),
                vmem_limit_bytes=vmem_limit_bytes,
            ),
        )

    try:
        out = _build(True)(bags, weight, bias2d)
    except Exception:
        # Older jax without Buffered(1) support for resident operands:
        # fall back to default double-buffering (same semantics).
        out = _build(False)(bags, weight, bias2d)
    return out


def reference(bags, weight, bias):
    return jnp.mean(bags, axis=1) @ weight + bias


if __name__ == "__main__":
    key = jax.random.PRNGKey(0)
    k_bags, k_w, k_b = jax.random.split(key, 3)

    # 1) Small shapes consistent with the module: batch=2 bags, 8 instances,
    #    in_feats=32, out_dim=16.
    B, N, F, O = 2, 8, 32, 16
    bags = jax.random.normal(k_bags, (B, N, F), dtype=jnp.float32)
    bound = 1.0 / (F ** 0.5)   # nn.Linear default init range
    weight = jax.random.uniform(k_w, (F, O), minval=-bound, maxval=bound, dtype=jnp.float32)
    bias = jax.random.uniform(k_b, (O,), minval=-bound, maxval=bound, dtype=jnp.float32)

    out = jax.block_until_ready(global_pool_mil(bags, weight, bias))
    ref = reference(bags, weight, bias)
    assert out.shape == (B, O)
    assert jnp.allclose(out, ref, atol=1e-5, rtol=1e-5), "mismatch vs reference (small)"

    # 2) Multiple bag tiles, multiple N chunks, B tail (20 bags, tb=8) -- no pad.
    B2, N2, F2_, O2 = 20, 24, 128, 16
    kb2, kw2, kbi2 = jax.random.split(jax.random.PRNGKey(1), 3)
    bags2 = jax.random.normal(kb2, (B2, N2, F2_), dtype=jnp.float32)
    w2 = jax.random.normal(kw2, (F2_, O2), dtype=jnp.float32) * 0.05
    b2 = jax.random.normal(kbi2, (O2,), dtype=jnp.float32) * 0.05

    out2 = jax.block_until_ready(global_pool_mil(bags2, w2, b2, tb=8, tn=8))
    ref2 = reference(bags2, w2, b2)
    assert out2.shape == (B2, O2)
    assert jnp.allclose(out2, ref2, atol=1e-4, rtol=1e-4), "mismatch vs reference (tiled)"

    # 3) Non-divisible N (N=13, tn=8) -> exercises the in-kernel tail mask,
    #    plus a B tail (B=5 into a tb=8 tile).
    B3, N3, F3, O3 = 5, 13, 64, 8
    kb3, kw3, kbi3 = jax.random.split(jax.random.PRNGKey(2), 3)
    bags3 = jax.random.normal(kb3, (B3, N3, F3), dtype=jnp.float32)
    w3 = jax.random.normal(kw3, (F3, O3), dtype=jnp.float32) * 0.1
    b3 = jax.random.normal(kbi3, (O3,), dtype=jnp.float32) * 0.1

    out3 = jax.block_until_ready(global_pool_mil(bags3, w3, b3, tn=8))
    ref3 = reference(bags3, w3, b3)
    assert out3.shape == (B3, O3)
    assert jnp.allclose(out3, ref3, atol=1e-4, rtol=1e-4), "mismatch vs reference (masked tail)"

    # 4) bf16 mixed-precision smoke test (documented: matmul in native dtype
    #    with f32 accumulation, so tolerance is loose vs the f32 reference).
    out4 = jax.block_until_ready(global_pool_mil(
        bags2.astype(jnp.bfloat16), w2.astype(jnp.bfloat16), b2.astype(jnp.bfloat16)))
    assert out4.shape == (B2, O2)
    assert jnp.allclose(out4.astype(jnp.float32), ref2, atol=5e-2, rtol=5e-2), \
        "mismatch vs reference (bf16)"

    print("KERNEL_OK")
</pallas_src>

<mosaic_0001>
module attributes {stable_mosaic.version = 11 : i64} {
  func.func @_global_pool_mil_kernel(%arg0: i32, %arg1: i32, %arg2: memref<8x8x32xf32, #tpu.memory_space<vmem>>, %arg3: memref<32x16xf32, #tpu.memory_space<vmem>>, %arg4: memref<1x16xf32, #tpu.memory_space<vmem>>, %arg5: memref<8x16xf32, #tpu.memory_space<vmem>>, %arg6: memref<8x32xf32, #tpu.memory_space<vmem>>) attributes {dimension_semantics = [#tpu.dimension_semantics<parallel>, #tpu.dimension_semantics<arbitrary>], iteration_bounds = array<i64: 1, 1>, scalar_prefetch = 0 : i64, scratch_operands = 1 : i64, tpu.core_type = #tpu.core_type<tc>, window_params = [{transform_indices = @transform_0, window_bounds = array<i64: 8, 8, 32>}, {pipeline_mode = #tpu.pipeline_mode<synchronous>, transform_indices = @transform_1, window_bounds = array<i64: 32, 16>}, {pipeline_mode = #tpu.pipeline_mode<synchronous>, transform_indices = @transform_2, window_bounds = array<i64: 1, 16>}, {transform_indices = @transform_3, window_bounds = array<i64: 8, 16>}]} {
    %c0_i32 = arith.constant 0 : i32
    %0 = arith.cmpi eq, %arg1, %c0_i32 : i32
    %1 = arith.extui %0 : i1 to i32
    %c0_i32_0 = arith.constant 0 : i32
    %2 = arith.cmpi ne, %1, %c0_i32_0 : i32
    scf.if %2 {
      %cst_9 = arith.constant 0.000000e+00 : f32
      %11 = vector.broadcast %cst_9 : f32 to vector<8x32xf32>
      %c0_10 = arith.constant 0 : index
      %c0_11 = arith.constant 0 : index
      %12 = vector.load %arg6[%c0_10, %c0_11] : memref<8x32xf32, #tpu.memory_space<vmem>>, vector<8x32xf32>
      tpu.vector_store %arg6[%c0_10, %c0_11], %11 {strides = array<i32>} : memref<8x32xf32, #tpu.memory_space<vmem>>, vector<8x32xf32>,
    } else {
    }
    %c0 = arith.constant 0 : index
    %c0_1 = arith.constant 0 : index
    %c0_2 = arith.constant 0 : index
    %3 = vector.load %arg2[%c0, %c0_1, %c0_2] : memref<8x8x32xf32, #tpu.memory_space<vmem>>, vector<8x8x32xf32>
    %c0_3 = arith.constant 0 : index
    %c0_4 = arith.constant 0 : index
    %4 = vector.load %arg6[%c0_3, %c0_4] : memref<8x32xf32, #tpu.memory_space<vmem>>, vector<8x32xf32>
    %cst = arith.constant dense<0.000000e+00> : vector<8x32xf32>
    %5 = vector.multi_reduction <add>, %3, %cst [1] : vector<8x8x32xf32> to vector<8x32xf32>
    %6 = arith.addf %4, %5 : vector<8x32xf32>
    %c0_5 = arith.constant 0 : index
    %c0_6 = arith.constant 0 : index
    %7 = vector.load %arg6[%c0_5, %c0_6] : memref<8x32xf32, #tpu.memory_space<vmem>>, vector<8x32xf32>
    tpu.vector_store %arg6[%c0_5, %c0_6], %6 {strides = array<i32>} : memref<8x32xf32, #tpu.memory_space<vmem>>, vector<8x32xf32>,
    %c0_i32_7 = arith.constant 0 : i32
    %8 = arith.cmpi eq, %arg1, %c0_i32_7 : i32
    %9 = arith.extui %8 : i1 to i32
    %c0_i32_8 = arith.constant 0 : i32
    %10 = arith.cmpi ne, %9, %c0_i32_8 : i32
    scf.if %10 {
      %c0_9 = arith.constant 0 : index
      %c0_10 = arith.constant 0 : index
      %11 = vector.load %arg6[%c0_9, %c0_10] : memref<8x32xf32, #tpu.memory_space<vmem>>, vector<8x32xf32>
      %c0_11 = arith.constant 0 : index
      %c0_12 = arith.constant 0 : index
      %12 = vector.load %arg3[%c0_11, %c0_12] : memref<32x16xf32, #tpu.memory_space<vmem>>, vector<32x16xf32>
      %cst_13 = arith.constant dense<0.000000e+00> : vector<8x16xf32>
      %13 = tpu.matmul %11, %12, %cst_13 {dimension_numbers = #tpu.dot_dimension_numbers<[1], [0], [0], [1], [0, 0, 1, 1], [], []>} : vector<8x32xf32>, vector<32x16xf32>, vector<8x16xf32> -> vector<8x16xf32>
      %cst_14 = arith.constant 1.250000e-01 : f32
      %14 = vector.broadcast %cst_14 : f32 to vector<8x16xf32>
      %15 = arith.mulf %13, %14 : vector<8x16xf32>
      %c0_15 = arith.constant 0 : index
      %c0_16 = arith.constant 0 : index
      %16 = vector.load %arg4[%c0_15, %c0_16] : memref<1x16xf32, #tpu.memory_space<vmem>>, vector<1x16xf32>
      %17 = vector.broadcast %16 : vector<1x16xf32> to vector<8x16xf32>
      %18 = arith.addf %15, %17 : vector<8x16xf32>
      %c0_17 = arith.constant 0 : index
      %c0_18 = arith.constant 0 : index
      %19 = vector.load %arg5[%c0_17, %c0_18] : memref<8x16xf32, #tpu.memory_space<vmem>>, vector<8x16xf32>
      tpu.vector_store %arg5[%c0_17, %c0_18], %18 {strides = array<i32>} : memref<8x16xf32, #tpu.memory_space<vmem>>, vector<8x16xf32>,
    } else {
    }
    return
  }
  func.func @transform_0(%arg0: i32, %arg1: i32) -> (i32, i32, i32) {
    %c0_i32 = arith.constant 0 : i32
    %c0_i32_0 = arith.constant 0 : i32
    return %arg0, %arg1, %c0_i32 : i32, i32, i32
  }
  func.func @transform_1(%arg0: i32, %arg1: i32) -> (i32, i32) {
    %c0_i32 = arith.constant 0 : i32
    %c0_i32_0 = arith.constant 0 : i32
    %c0_i32_1 = arith.constant 0 : i32
    return %c0_i32, %c0_i32_0 : i32, i32
  }
  func.func @transform_2(%arg0: i32, %arg1: i32) -> (i32, i32) {
    %c0_i32 = arith.constant 0 : i32
    %c0_i32_0 = arith.constant 0 : i32
    %c0_i32_1 = arith.constant 0 : i32
    return %c0_i32, %c0_i32_0 : i32, i32
  }
  func.func @transform_3(%arg0: i32, %arg1: i32) -> (i32, i32) {
    %c0_i32 = arith.constant 0 : i32
    %c0_i32_0 = arith.constant 0 : i32
    return %arg0, %c0_i32 : i32, i32
  }
}

module attributes {stable_mosaic.version = 11 : i64} {
  func.func @_global_pool_mil_kernel(%arg0: i32, %arg1: i32, %arg2: memref<8x8x32xf32, #tpu.memory_space<vmem>>, %arg3: memref<32x16xf32, #tpu.memory_space<vmem>>, %arg4: memref<1x16xf32, #tpu.memory_space<vmem>>, %arg5: memref<8x16xf32, #tpu.memory_space<vmem>>, %arg6: memref<8x32xf32, #tpu.memory_space<vmem>>) attributes {dimension_semantics = [#tpu.dimension_semantics<parallel>, #tpu.dimension_semantics<arbitrary>], iteration_bounds = array<i64: 1, 1>, scalar_prefetch = 0 : i64, scratch_operands = 1 : i64, tpu.core_type = #tpu.core_type<tc>, window_params = [{transform_indices = @transform_0, window_bounds = array<i64: 8, 8, 32>}, {pipeline_mode = #tpu.pipeline_mode<synchronous>, transform_indices = @transform_1, window_bounds = array<i64: 32, 16>}, {pipeline_mode = #tpu.pipeline_mode<synchronous>, transform_indices = @transform_2, window_bounds = array<i64: 1, 16>}, {transform_indices = @transform_3, window_bounds = array<i64: 8, 16>}]} {
    %c0_i32 = arith.constant 0 : i32
    %0 = arith.cmpi eq, %arg1, %c0_i32 : i32
    %1 = arith.extui %0 : i1 to i32
    %c0_i32_0 = arith.constant 0 : i32
    %2 = arith.cmpi ne, %1, %c0_i32_0 : i32
    scf.if %2 {
      %cst_9 = arith.constant 0.000000e+00 : f32
      %11 = vector.broadcast %cst_9 : f32 to vector<8x32xf32>
      %c0_10 = arith.constant 0 : index
      %c0_11 = arith.constant 0 : index
      %12 = vector.load %arg6[%c0_10, %c0_11] : memref<8x32xf32, #tpu.memory_space<vmem>>, vector<8x32xf32>
      tpu.vector_store %arg6[%c0_10, %c0_11], %11 {strides = array<i32>} : memref<8x32xf32, #tpu.memory_space<vmem>>, vector<8x32xf32>,
    } else {
    }
    %c0 = arith.constant 0 : index
    %c0_1 = arith.constant 0 : index
    %c0_2 = arith.constant 0 : index
    %3 = vector.load %arg2[%c0, %c0_1, %c0_2] : memref<8x8x32xf32, #tpu.memory_space<vmem>>, vector<8x8x32xf32>
    %c0_3 = arith.constant 0 : index
    %c0_4 = arith.constant 0 : index
    %4 = vector.load %arg6[%c0_3, %c0_4] : memref<8x32xf32, #tpu.memory_space<vmem>>, vector<8x32xf32>
    %cst = arith.constant dense<0.000000e+00> : vector<8x32xf32>
    %5 = vector.multi_reduction <add>, %3, %cst [1] : vector<8x8x32xf32> to vector<8x32xf32>
    %6 = arith.addf %4, %5 : vector<8x32xf32>
    %c0_5 = arith.constant 0 : index
    %c0_6 = arith.constant 0 : index
    %7 = vector.load %arg6[%c0_5, %c0_6] : memref<8x32xf32, #tpu.memory_space<vmem>>, vector<8x32xf32>
    tpu.vector_store %arg6[%c0_5, %c0_6], %6 {strides = array<i32>} : memref<8x32xf32, #tpu.memory_space<vmem>>, vector<8x32xf32>,
    %c0_i32_7 = arith.constant 0 : i32
    %8 = arith.cmpi eq, %arg1, %c0_i32_7 : i32
    %9 = arith.extui %8 : i1 to i32
    %c0_i32_8 = arith.constant 0 : i32
    %10 = arith.cmpi ne, %9, %c0_i32_8 : i32
    scf.if %10 {
      %c0_9 = arith.constant 0 : index
      %c0_10 = arith.constant 0 : index
      %11 = vector.load %arg6[%c0_9, %c0_10] : memref<8x32xf32, #tpu.memory_space<vmem>>, vector<8x32xf32>
      %c0_11 = arith.constant 0 : index
      %c0_12 = arith.constant 0 : index
      %12 = vector.load %arg3[%c0_11, %c0_12] : memref<32x16xf32, #tpu.memory_space<vmem>>, vector<32x16xf32>
      %cst_13 = arith.constant dense<0.000000e+00> : vector<8x16xf32>
      %13 = tpu.matmul %11, %12, %cst_13 {dimension_numbers = #tpu.dot_dimension_numbers<[1], [0], [0], [1], [0, 0, 1, 1], [], []>} : vector<8x32xf32>, vector<32x16xf32>, vector<8x16xf32> -> vector<8x16xf32>
      %cst_14 = arith.constant 1.250000e-01 : f32
      %14 = vector.broadcast %cst_14 : f32 to vector<8x16xf32>
      %15 = arith.mulf %13, %14 : vector<8x16xf32>
      %c0_15 = arith.constant 0 : index
      %c0_16 = arith.constant 0 : index
      %16 = vector.load %arg4[%c0_15, %c0_16] : memref<1x16xf32, #tpu.memory_space<vmem>>, vector<1x16xf32>
      %17 = vector.broadcast %16 : vector<1x16xf32> to vector<8x16xf32>
      %18 = arith.addf %15, %17 : vector<8x16xf32>
      %c0_17 = arith.constant 0 : index
      %c0_18 = arith.constant 0 : index
      %19 = vector.load %arg5[%c0_17, %c0_18] : memref<8x16xf32, #tpu.memory_space<vmem>>, vector<8x16xf32>
      tpu.vector_store %arg5[%c0_17, %c0_18], %18 {strides = array<i32>} : memref<8x16xf32, #tpu.memory_space<vmem>>, vector<8x16xf32>,
    } else {
    }
    return
  }
  func.func @transform_0(%arg0: i32, %arg1: i32) -> (i32, i32, i32) {
    %c0_i32 = arith.constant 0 : i32
    %c0_i32_0 = arith.constant 0 : i32
    return %arg0, %arg1, %c0_i32 : i32, i32, i32
  }
  func.func @transform_1(%arg0: i32, %arg1: i32) -> (i32, i32) {
    %c0_i32 = arith.constant 0 : i32
    %c0_i32_0 = arith.constant 0 : i32
    %c0_i32_1 = arith.constant 0 : i32
    return %c0_i32, %c0_i32_0 : i32, i32
  }
  func.func @transform_2(%arg0: i32, %arg1: i32) -> (i32, i32) {
    %c0_i32 = arith.constant 0 : i32
    %c0_i32_0 = arith.constant 0 : i32
    %c0_i32_1 = arith.constant 0 : i32
    return %c0_i32, %c0_i32_0 : i32, i32
  }
  func.func @transform_3(%arg0: i32, %arg1: i32) -> (i32, i32) {
    %c0_i32 = arith.constant 0 : i32
    %c0_i32_0 = arith.constant 0 : i32
    return %arg0, %c0_i32 : i32, i32
  }
}

</mosaic_0001>

<bundles_post_ra>
// kernel: tpu_custom_call.1
= control target key start
LH: loop header
LB: loop body
LE: loop exit
PB: predicated region body
PF: predicated region fallthrough
CT: control target
= control target key end

     0   :  { %8 = vsyncpa [#allocation4], 0  ;;  %vm19_vm0 = vcmask 261120   ;;  %v274_v2 = vmov 0.0|0.0   ;;  %v275_v7 = vmov 0.0   ;;  %vm95_vm1 = vcmask 1041409   ;;  %s366_s0 = inlined_call_operand.vmem [shape: f32[2,8,32], index: 0, kind: input, shape index: {}]   ;;  %s367_s1 = inlined_call_operand.vmem [shape: f32[32,16], index: 1, kind: input, shape index: {}]   ;;  %s368_s2 = inlined_call_operand.vmem [shape: f32[1,16], index: 2, kind: input, shape index: {}]   ;;  %s369_s3 = inlined_call_operand.hbm [shape: f32[2,16], index: 3, kind: output, shape index: {}]  }
   0x1   :  { %v116_v0 = vld [vmem:[%s367_s1] sm:$0xff]  ;;  %v117_v1 = vld [vmem:[%s367_s1 + $0x8] sm:$0xff]  ;;  %238 = vmatprep.subr.bf16.mxu0 %v274_v2  ;;  %v118_v4 = vld [vmem:[%s367_s1 + $0x10] sm:$0xff]  ;;  %20 = vst.msk [vmem:[#allocation2] sm:$0xff] %vm19_vm0, %v275_v7  ;;  %vm97_vm2 = vcmask 1042434   ;;  %vm99_vm3 = vcmask 1043459  }
   0x2   :  { %v239_v3 = vpack.c.bf16 %v117_v1, %v116_v0  ;;  %v119_v5 = vld [vmem:[%s367_s1 + $0x18] sm:$0xff]  ;;  %v21_v6 = vld [vmem:[%s366_s0] sm:$0xff]  ;;  %v22_v8 = vld [vmem:[%s366_s0 + $0x8] sm:$0xff]  ;;  %vm101_vm4 = vcmask 1044484   ;;  %vm103_vm5 = vcmask 1045509   ;;  %vm105_vm6 = vcmask 1046534  }
   0x3   :  { %v23_v9 = vld [vmem:[%s366_s0 + $0x10] sm:$0xff]  ;;  %v24_v10 = vld [vmem:[%s366_s0 + $0x18] sm:$0xff]  ;;  %v31_v11 = vsel %vm19_vm0, %v21_v6, 0.0  ;;  %v242_v12 = vpack.c.bf16 %v119_v5, %v118_v4  ;;  %v25_v13 = vld [vmem:[%s366_s0 + $0x20] sm:$0xff]  ;;  %v38_v17 = vsel %vm19_vm0, %v22_v8, 0.0  ;;  %vm276_vm7 = vmmov 0  }
   0x4   :  { %240 = vmatpush3.bf16.msra.mxu0 %v239_v3  ;;  %v26_v14 = vld [vmem:[%s366_s0 + $0x28] sm:$0xff]  ;;  %v27_v15 = vld [vmem:[%s366_s0 + $0x30] sm:$0xff]  ;;  %v32_v16 = vrot.slane %v31_v11, 4  ;;  %v45_v18 = vsel %vm19_vm0, %v23_v9, 0.0  ;;  %v39_v19 = vrot.slane %v38_v17, 4  ;;  %v52_v21 = vsel %vm19_vm0, %v24_v10, 0.0  ;;  %235 = vmatprep.mubr.msk.f32.mxu0 %vm276_vm7, %v275_v7 }
   0x5   :  { %241 = vmatprep.subr.bf16.mxu0 %v274_v2  ;;  %v46_v20 = vrot.slane %v45_v18, 4  ;;  %v59_v22 = vsel %vm19_vm0, %v25_v13, 0.0  ;;  %v28_v23 = vld [vmem:[%s366_s0 + $0x38] sm:$0xff]  ;;  %v53_v25 = vrot.slane %v52_v21, 4  ;;  %v66_v27 = vsel %vm19_vm0, %v26_v14, 0.0 }
   0x6   :  { %v33_v24 = vadd.f32 %v32_v16, %v31_v11  ;;  %v60_v26 = vrot.slane %v59_v22, 4  ;;  %v40_v28 = vadd.f32 %v39_v19, %v38_v17  ;;  %v67_v30 = vrot.slane %v66_v27, 4 }
   0x7   :  { %v47_v29 = vadd.f32 %v46_v20, %v45_v18  ;;  %v73_v31 = vsel %vm19_vm0, %v27_v15, 0.0  ;;  %v54_v33 = vadd.f32 %v53_v25, %v52_v21  ;;  %v80_v39 = vsel %vm19_vm0, %v28_v23, 0.0  ;;  %v221_v20 = vld [vmem:[%s368_s2] ss:$0 sm:$0xff] }
   0x8   :  { %243 = vmatpush3.bf16.msra.mxu0 %v242_v12  ;;  %v34_v32 = vrot.slane %v33_v24, 2  ;;  %v61_v34 = vadd.f32 %v60_v26, %v59_v22  ;;  %v74_v35 = vrot.slane %v73_v31, 4  ;;  %v41_v36 = vrot.slane %v40_v28, 2  ;;  %v29_v12 = vld [vmem:[#allocation2] sm:$0xff] }
   0x9   :  { %v48_v37 = vrot.slane %v47_v29, 2  ;;  %v68_v38 = vadd.f32 %v67_v30, %v66_v27  ;;  %v55_v41 = vrot.slane %v54_v33, 2  ;;  %v81_v47 = vrot.slane %v80_v39, 4 }
   0xa   :  { %v35_v40 = vadd.f32 %v34_v32, %v33_v24  ;;  %v62_v42 = vrot.slane %v61_v34, 2  ;;  %v75_v43 = vadd.f32 %v74_v35, %v73_v31  ;;  %v42_v44 = vadd.f32 %v41_v36, %v40_v28 }
   0xb   :  { %v49_v45 = vadd.f32 %v48_v37, %v47_v29  ;;  %v69_v46 = vrot.slane %v68_v38, 2  ;;  %v56_v49 = vadd.f32 %v55_v41, %v54_v33  ;;  %v82_v55 = vadd.f32 %v81_v47, %v80_v39 }
   0xc   :  { %v36_v48 = vrot.slane %v35_v40, 1  ;;  %v63_v50 = vadd.f32 %v62_v42, %v61_v34  ;;  %v76_v51 = vrot.slane %v75_v43, 2  ;;  %v43_v52 = vrot.slane %v42_v44, 1 }
   0xd   :  { %v50_v53 = vrot.slane %v49_v45, 1  ;;  %v70_v54 = vadd.f32 %v69_v46, %v68_v38  ;;  %v57_v57 = vrot.slane %v56_v49, 1  ;;  %v83_v63 = vrot.slane %v82_v55, 2 }
   0xe   :  { %v37_v56 = vadd.f32 %v36_v48, %v35_v40  ;;  %v64_v58 = vrot.slane %v63_v50, 1  ;;  %v77_v59 = vadd.f32 %v76_v51, %v75_v43  ;;  %v44_v60 = vadd.f32 %v43_v52, %v42_v44 }
   0xf   :  { %v51_v61 = vadd.f32 %v50_v53, %v49_v45  ;;  %v71_v62 = vrot.slane %v70_v54, 1  ;;  %v58_v0 = vadd.f32 %v57_v57, %v56_v49  ;;  %v84_v4 = vadd.f32 %v83_v63, %v82_v55 }
  0x10   :  { %v65_v1 = vadd.f32 %v64_v58, %v63_v50  ;;  %v78_v2 = vrot.slane %v77_v59, 1  ;;  %v96_v5 = vsel %vm95_vm1, %v44_v60, %v37_v56  ;;  %vm107_vm8 = vcmask 1047559  }
  0x11   :  { %v72_v3 = vadd.f32 %v71_v62, %v70_v54  ;;  %v98_v8 = vsel %vm97_vm2, %v51_v61, %v96_v5  ;;  %v85_v9 = vrot.slane %v84_v4, 1  ;;  %vm202_vm9 = vcmask 130048  }
  0x12   :  { %v79_v6 = vadd.f32 %v78_v2, %v77_v59  ;;  %v100_v10 = vsel %vm99_vm3, %v58_v0, %v98_v8 }
  0x13   :  { %v102_v11 = vsel %vm101_vm4, %v65_v1, %v100_v10  ;;  %v86_v13 = vadd.f32 %v85_v9, %v84_v4 }
  0x14   :  { %v104_v14 = vsel %vm103_vm5, %v72_v3, %v102_v11 }
  0x15   :  { %v106_v15 = vsel %vm105_vm6, %v79_v6, %v104_v14 }
  0x16   :  { %v108_v16 = vsel %vm107_vm8, %v86_v13, %v106_v15 }
  0x17   :  { %v110_v17 = vadd.f32 %v108_v16, %v29_v12 }
  0x19   :  { %111 = vst.msk [vmem:[#allocation2] sm:$0xff] %vm19_vm0, %v110_v17 }
  0x20   :  { %v115_v18 = vld [vmem:[#allocation2] sm:$0xff] }
  0x21   :  { %236 = vmatmul.mubr.msk.f32.vlgmr.msra.gmra.mrb[0].mxu0 %vm19_vm0, %v115_v18 }
  0xf4   :  { %v189_v19 = vpop.f32.mrb[0].mxu0 }
  0xf5   :  { %v193_v21 = vmul.f32 0.125, %v189_v19  ;;  %v237_v7 = vpop.f32.mrb[1].mxu0 }
  0xf7   :  { %v201_v22 = vadd.f32 %v221_v20, %v193_v21 }
  0xf9   :  { %203 = vst.msk [vmem:[#allocation3] sm:$0xff] %vm202_vm9, %v201_v22 }
  0xfa   :  { %208 = vsyncadd [#allocation4], 96  ;;  %s277_s9 = smov [#allocation3]  }
  0xfb   :  { %s209_s10 = sshll.u32 %s277_s9, 4  ;;  %s210_s10 = int_to_ptr.vmem [resolvable:$true] %s209_s10 }
  0xfc   :  { %s250_s11 = scalar_lea.vmem %s210_s10, 32  ;;  %s254_s12 = scalar_lea.vmem %s210_s10, 128 }
  0xfd   :  { %p251_p0 = scmp.ne.s32.totalorder %s210_s10, %s250_s11  ;;  %p255_p1 = scmp.lt.s32.totalorder %s210_s10, %s210_s10 }
  0xfe   :  { %p256_p2 = scmp.lt.s32.totalorder %s254_s12, %s250_s11 }
 0x100   :  { %p257_p3 = por %p256_p2, %p255_p1 }
 0x102   :  { %p258_p4 = pnand %p257_p3, %p251_p0 }
 0x104   :  { %261 = shalt.err (!%p258_p4)
}
 0x105   :  { %s262_s2 = scalar_lea.hbm %s369_s3, 32 }
 0x106   :  { %p263_p5 = scmp.ne.s32.totalorder %s369_s3, %s262_s2  ;;  %p266_p6 = scmp.lt.u32.totalorder %s262_s2, %s369_s3 }
 0x108   :  { %p268_p7 = pnand %p266_p6, %p263_p5 }
 0x10a   :  { %271 = shalt.err (!%p268_p7)
}
 0x10b   :  { %s278_s19 = smov 32   ;;  %s279_s20 = smov 2  }
 0x10c   :  { %215 = dma.vmem_to_hbm [thread:$0]  %s210_s10, 32, %s369_s3, [#allocation4], %s278_s19, %s278_s19, %s279_s20  }
 0x10d   :  { %272 = dma.done.wait [#allocation4], 128  }
 0x10e   :  { %273 = vsyncadd [#allocation4], 4294967168 }
 0x10f   :  { %219 = vsyncpa [#allocation4], 1 }

// kernel: tpu_custom_call.1
= control target key start
LH: loop header
LB: loop body
LE: loop exit
PB: predicated region body
PF: predicated region fallthrough
CT: control target
= control target key end

     0   :  { %8 = vsyncpa [#allocation4], 0  ;;  %vm19_vm0 = vcmask 261120   ;;  %v274_v2 = vmov 0.0|0.0   ;;  %v275_v7 = vmov 0.0   ;;  %vm95_vm1 = vcmask 1041409   ;;  %s366_s0 = inlined_call_operand.vmem [shape: f32[2,8,32], index: 0, kind: input, shape index: {}]   ;;  %s367_s1 = inlined_call_operand.vmem [shape: f32[32,16], index: 1, kind: input, shape index: {}]   ;;  %s368_s2 = inlined_call_operand.vmem [shape: f32[1,16], index: 2, kind: input, shape index: {}]   ;;  %s369_s3 = inlined_call_operand.hbm [shape: f32[2,16], index: 3, kind: output, shape index: {}]  }
   0x1   :  { %v116_v0 = vld [vmem:[%s367_s1] sm:$0xff]  ;;  %v117_v1 = vld [vmem:[%s367_s1 + $0x8] sm:$0xff]  ;;  %238 = vmatprep.subr.bf16.mxu0 %v274_v2  ;;  %v118_v4 = vld [vmem:[%s367_s1 + $0x10] sm:$0xff]  ;;  %20 = vst.msk [vmem:[#allocation2] sm:$0xff] %vm19_vm0, %v275_v7  ;;  %vm97_vm2 = vcmask 1042434   ;;  %vm99_vm3 = vcmask 1043459  }
   0x2   :  { %v239_v3 = vpack.c.bf16 %v117_v1, %v116_v0  ;;  %v119_v5 = vld [vmem:[%s367_s1 + $0x18] sm:$0xff]  ;;  %v21_v6 = vld [vmem:[%s366_s0] sm:$0xff]  ;;  %v22_v8 = vld [vmem:[%s366_s0 + $0x8] sm:$0xff]  ;;  %vm101_vm4 = vcmask 1044484   ;;  %vm103_vm5 = vcmask 1045509   ;;  %vm105_vm6 = vcmask 1046534  }
   0x3   :  { %v23_v9 = vld [vmem:[%s366_s0 + $0x10] sm:$0xff]  ;;  %v24_v10 = vld [vmem:[%s366_s0 + $0x18] sm:$0xff]  ;;  %v31_v11 = vsel %vm19_vm0, %v21_v6, 0.0  ;;  %v242_v12 = vpack.c.bf16 %v119_v5, %v118_v4  ;;  %v25_v13 = vld [vmem:[%s366_s0 + $0x20] sm:$0xff]  ;;  %v38_v17 = vsel %vm19_vm0, %v22_v8, 0.0  ;;  %vm276_vm7 = vmmov 0  }
   0x4   :  { %240 = vmatpush3.bf16.msra.mxu0 %v239_v3  ;;  %v26_v14 = vld [vmem:[%s366_s0 + $0x28] sm:$0xff]  ;;  %v27_v15 = vld [vmem:[%s366_s0 + $0x30] sm:$0xff]  ;;  %v32_v16 = vrot.slane %v31_v11, 4  ;;  %v45_v18 = vsel %vm19_vm0, %v23_v9, 0.0  ;;  %v39_v19 = vrot.slane %v38_v17, 4  ;;  %v52_v21 = vsel %vm19_vm0, %v24_v10, 0.0  ;;  %235 = vmatprep.mubr.msk.f32.mxu0 %vm276_vm7, %v275_v7 }
   0x5   :  { %241 = vmatprep.subr.bf16.mxu0 %v274_v2  ;;  %v46_v20 = vrot.slane %v45_v18, 4  ;;  %v59_v22 = vsel %vm19_vm0, %v25_v13, 0.0  ;;  %v28_v23 = vld [vmem:[%s366_s0 + $0x38] sm:$0xff]  ;;  %v53_v25 = vrot.slane %v52_v21, 4  ;;  %v66_v27 = vsel %vm19_vm0, %v26_v14, 0.0 }
   0x6   :  { %v33_v24 = vadd.f32 %v32_v16, %v31_v11  ;;  %v60_v26 = vrot.slane %v59_v22, 4  ;;  %v40_v28 = vadd.f32 %v39_v19, %v38_v17  ;;  %v67_v30 = vrot.slane %v66_v27, 4 }
   0x7   :  { %v47_v29 = vadd.f32 %v46_v20, %v45_v18  ;;  %v73_v31 = vsel %vm19_vm0, %v27_v15, 0.0  ;;  %v54_v33 = vadd.f32 %v53_v25, %v52_v21  ;;  %v80_v39 = vsel %vm19_vm0, %v28_v23, 0.0  ;;  %v221_v20 = vld [vmem:[%s368_s2] ss:$0 sm:$0xff] }
   0x8   :  { %243 = vmatpush3.bf16.msra.mxu0 %v242_v12  ;;  %v34_v32 = vrot.slane %v33_v24, 2  ;;  %v61_v34 = vadd.f32 %v60_v26, %v59_v22  ;;  %v74_v35 = vrot.slane %v73_v31, 4  ;;  %v41_v36 = vrot.slane %v40_v28, 2  ;;  %v29_v12 = vld [vmem:[#allocation2] sm:$0xff] }
   0x9   :  { %v48_v37 = vrot.slane %v47_v29, 2  ;;  %v68_v38 = vadd.f32 %v67_v30, %v66_v27  ;;  %v55_v41 = vrot.slane %v54_v33, 2  ;;  %v81_v47 = vrot.slane %v80_v39, 4 }
   0xa   :  { %v35_v40 = vadd.f32 %v34_v32, %v33_v24  ;;  %v62_v42 = vrot.slane %v61_v34, 2  ;;  %v75_v43 = vadd.f32 %v74_v35, %v73_v31  ;;  %v42_v44 = vadd.f32 %v41_v36, %v40_v28 }
   0xb   :  { %v49_v45 = vadd.f32 %v48_v37, %v47_v29  ;;  %v69_v46 = vrot.slane %v68_v38, 2  ;;  %v56_v49 = vadd.f32 %v55_v41, %v54_v33  ;;  %v82_v55 = vadd.f32 %v81_v47, %v80_v39 }
   0xc   :  { %v36_v48 = vrot.slane %v35_v40, 1  ;;  %v63_v50 = vadd.f32 %v62_v42, %v61_v34  ;;  %v76_v51 = vrot.slane %v75_v43, 2  ;;  %v43_v52 = vrot.slane %v42_v44, 1 }
   0xd   :  { %v50_v53 = vrot.slane %v49_v45, 1  ;;  %v70_v54 = vadd.f32 %v69_v46, %v68_v38  ;;  %v57_v57 = vrot.slane %v56_v49, 1  ;;  %v83_v63 = vrot.slane %v82_v55, 2 }
   0xe   :  { %v37_v56 = vadd.f32 %v36_v48, %v35_v40  ;;  %v64_v58 = vrot.slane %v63_v50, 1  ;;  %v77_v59 = vadd.f32 %v76_v51, %v75_v43  ;;  %v44_v60 = vadd.f32 %v43_v52, %v42_v44 }
   0xf   :  { %v51_v61 = vadd.f32 %v50_v53, %v49_v45  ;;  %v71_v62 = vrot.slane %v70_v54, 1  ;;  %v58_v0 = vadd.f32 %v57_v57, %v56_v49  ;;  %v84_v4 = vadd.f32 %v83_v63, %v82_v55 }
  0x10   :  { %v65_v1 = vadd.f32 %v64_v58, %v63_v50  ;;  %v78_v2 = vrot.slane %v77_v59, 1  ;;  %v96_v5 = vsel %vm95_vm1, %v44_v60, %v37_v56  ;;  %vm107_vm8 = vcmask 1047559  }
  0x11   :  { %v72_v3 = vadd.f32 %v71_v62, %v70_v54  ;;  %v98_v8 = vsel %vm97_vm2, %v51_v61, %v96_v5  ;;  %v85_v9 = vrot.slane %v84_v4, 1  ;;  %vm202_vm9 = vcmask 130048  }
  0x12   :  { %v79_v6 = vadd.f32 %v78_v2, %v77_v59  ;;  %v100_v10 = vsel %vm99_vm3, %v58_v0, %v98_v8 }
  0x13   :  { %v102_v11 = vsel %vm101_vm4, %v65_v1, %v100_v10  ;;  %v86_v13 = vadd.f32 %v85_v9, %v84_v4 }
  0x14   :  { %v104_v14 = vsel %vm103_vm5, %v72_v3, %v102_v11 }
  0x15   :  { %v106_v15 = vsel %vm105_vm6, %v79_v6, %v104_v14 }
  0x16   :  { %v108_v16 = vsel %vm107_vm8, %v86_v13, %v106_v15 }
  0x17   :  { %v110_v17 = vadd.f32 %v108_v16, %v29_v12 }
  0x19   :  { %111 = vst.msk [vmem:[#allocation2] sm:$0xff] %vm19_vm0, %v110_v17 }
  0x20   :  { %v115_v18 = vld [vmem:[#allocation2] sm:$0xff] }
  0x21   :  { %236 = vmatmul.mubr.msk.f32.vlgmr.msra.gmra.mrb[0].mxu0 %vm19_vm0, %v115_v18 }
  0xf4   :  { %v189_v19 = vpop.f32.mrb[0].mxu0 }
  0xf5   :  { %v193_v21 = vmul.f32 0.125, %v189_v19  ;;  %v237_v7 = vpop.f32.mrb[1].mxu0 }
  0xf7   :  { %v201_v22 = vadd.f32 %v221_v20, %v193_v21 }
  0xf9   :  { %203 = vst.msk [vmem:[#allocation3] sm:$0xff] %vm202_vm9, %v201_v22 }
  0xfa   :  { %208 = vsyncadd [#allocation4], 96  ;;  %s277_s9 = smov [#allocation3]  }
  0xfb   :  { %s209_s10 = sshll.u32 %s277_s9, 4  ;;  %s210_s10 = int_to_ptr.vmem [resolvable:$true] %s209_s10 }
  0xfc   :  { %s250_s11 = scalar_lea.vmem %s210_s10, 32  ;;  %s254_s12 = scalar_lea.vmem %s210_s10, 128 }
  0xfd   :  { %p251_p0 = scmp.ne.s32.totalorder %s210_s10, %s250_s11  ;;  %p255_p1 = scmp.lt.s32.totalorder %s210_s10, %s210_s10 }
  0xfe   :  { %p256_p2 = scmp.lt.s32.totalorder %s254_s12, %s250_s11 }
 0x100   :  { %p257_p3 = por %p256_p2, %p255_p1 }
 0x102   :  { %p258_p4 = pnand %p257_p3, %p251_p0 }
 0x104   :  { %261 = shalt.err (!%p258_p4)
}
 0x105   :  { %s262_s2 = scalar_lea.hbm %s369_s3, 32 }
 0x106   :  { %p263_p5 = scmp.ne.s32.totalorder %s369_s3, %s262_s2  ;;  %p266_p6 = scmp.lt.u32.totalorder %s262_s2, %s369_s3 }
 0x108   :  { %p268_p7 = pnand %p266_p6, %p263_p5 }
 0x10a   :  { %271 = shalt.err (!%p268_p7)
}
 0x10b   :  { %s278_s19 = smov 32   ;;  %s279_s20 = smov 2  }
 0x10c   :  { %215 = dma.vmem_to_hbm [thread:$0]  %s210_s10, 32, %s369_s3, [#allocation4], %s278_s19, %s278_s19, %s279_s20  }
 0x10d   :  { %272 = dma.done.wait [#allocation4], 128  }
 0x10e   :  { %273 = vsyncadd [#allocation4], 4294967168 }
 0x10f   :  { %219 = vsyncpa [#allocation4], 1 }

</bundles_post_ra>
